<compile_context>
chip_gen: v7x
topology: tpu7x:2x2x1
jax: 0.10.0
libtpu: 0.0.40
codegen_flags: <defaults>
</compile_context>

<pallas_src>
import jax
import jax.numpy as jnp
from jax.experimental import pallas as pl
from jax.experimental.pallas import tpu as pltpu


def _round_up(x, m):
    return (x + m - 1) // m * m


# ----------------------------------------------------------------------------
# Kernel: patch de-embedding matmul   y = tokens @ W_flat + bias_flat
#   tokens  : (TILE_M, E)        one tile of the (B*h*w, E) token matrix
#   W_flat  : (E, C*ph*pw)       ConvTranspose2d weight, flattened (no transpose)
#   bias    : (1, C*ph*pw)       bias[c] broadcast over the (ph, pw) patch
# ----------------------------------------------------------------------------
def _patch_deembed_kernel(x_ref, w_ref, b_ref, o_ref):
    acc = jnp.dot(x_ref[...], w_ref[...], preferred_element_type=jnp.float32)
    o_ref[...] = (acc + b_ref[...].astype(jnp.float32)).astype(o_ref.dtype)


def pallas_patch_deembed(tokens2d, w_flat, bias_flat, *, tile_m=256):
    """tokens2d: (M, E), w_flat: (E, CP), bias_flat: (1, CP) -> (M, CP)."""
    M, E = tokens2d.shape
    CP = w_flat.shape[1]

    # Tile over M only; K (=E) and Nout (=CP) stay full blocks (they are small
    # even for realistic ViT heads:  E<=1024, CP = C*ph*pw <= ~768).
    tile_m = min(tile_m, _round_up(M, 8))          # multiple of 8 (sublane)
    m_pad = _round_up(M, tile_m)
    if m_pad != M:
        tokens2d = jnp.pad(tokens2d, ((0, m_pad - M), (0, 0)))

    out = pl.pallas_call(
        _patch_deembed_kernel,
        out_shape=jax.ShapeDtypeStruct((m_pad, CP), tokens2d.dtype),
        grid_spec=pl.GridSpec(
            grid=(m_pad // tile_m,),
            in_specs=[
                pl.BlockSpec((tile_m, E), lambda i: (i, 0)),
                pl.BlockSpec((E, CP), lambda i: (0, 0)),
                pl.BlockSpec((1, CP), lambda i: (0, 0)),
            ],
            out_specs=pl.BlockSpec((tile_m, CP), lambda i: (i, 0)),
        ),
        compiler_params=pltpu.CompilerParams(
            dimension_semantics=("parallel",),
            # double-buffered (tile_m,E)+(E,CP)+(tile_m,CP)+bias is well under
            # this cap; 48 MiB leaves headroom on v7x's 64 MiB physical VMEM.
            vmem_limit_bytes=48 * 1024 * 1024,
        ),
    )(tokens2d, w_flat, bias_flat)

    return out[:M] if m_pad != M else out


# ----------------------------------------------------------------------------
# Full module forward
# ----------------------------------------------------------------------------
def reconstruct_ddf_forward(x, params, *, in_channels, patch_size, height, width):
    """x: (B, 1 + h*w, E) float32 -> (B, in_channels, height, width)."""
    B, N, E = x.shape
    ph, pw = patch_size
    h, w = height // ph, width // pw
    assert N == 1 + h * w, "sequence length must be 1 (CLS) + h*w patches"
    C = in_channels
    CP = C * ph * pw

    # drop CLS token, flatten tokens:  (B*h*w, E)
    tokens = x[:, 1:, :].reshape(B * h * w, E)

    # ConvTranspose2d weight is (E, C, ph, pw): contraction axis E already
    # leads, so flattening is a pure reshape (no transpose / extra HBM pass).
    w_flat = params["w"].reshape(E, CP)
    bias_flat = jnp.broadcast_to(
        params["b"][:, None, None], (C, ph, pw)).reshape(1, CP)

    # hot path: tiled Pallas matmul + bias          -> (B*h*w, C*ph*pw)
    y = pallas_patch_deembed(tokens, w_flat, bias_flat)

    # layout permute  'b (h w) (c i j) -> b c (h i) (w j)'   (plain-JAX glue)
    y = y.reshape(B, h, w, C, ph, pw)
    out = jnp.transpose(y, (0, 3, 1, 4, 2, 5)).reshape(B, C, h * ph, w * pw)
    return out


# ----------------------------------------------------------------------------
# Pure-JAX reference (definitional stride==kernel ConvTranspose2d)
# ----------------------------------------------------------------------------
def reference_forward(x, params, *, in_channels, patch_size, height, width):
    B, N, E = x.shape
    ph, pw = patch_size
    h, w = height // ph, width // pw
    C = in_channels

    t = x[:, 1:, :]                                       # (B, h*w, E)
    feat = jnp.transpose(t, (0, 2, 1)).reshape(B, E, h, w)  # 'b (h w) e -> b e h w'
    # out[b,c,hp*ph+i,wp*pw+j] = sum_e feat[b,e,hp,wp] * W[e,c,i,j] + bias[c]
    y = jnp.einsum("behw,ecij->bchiwj", feat, params["w"])
    y = y.reshape(B, C, h * ph, w * pw) + params["b"][None, :, None, None]
    return y


if __name__ == "__main__":
    # Small shapes consistent with the module:
    #   batch=2, in_channels=4, patch=(4,4), emb=32, height=width=16
    #   => h=w=4 patches, seq = 1 + 16 = 17, output (2, 4, 16, 16)
    B, C, E = 2, 4, 32
    PH, PW = 4, 4
    HEIGHT, WIDTH = 16, 16
    hp, wp = HEIGHT // PH, WIDTH // PW
    N = 1 + hp * wp

    key = jax.random.PRNGKey(0)
    k_x, k_w, k_b = jax.random.split(key, 3)

    x = jax.random.normal(k_x, (B, N, E), dtype=jnp.float32)
    params = {
        # ConvTranspose2d weight layout: (in_channels_of_layer=E, out_channels=C, kH, kW)
        "w": 0.05 * jax.random.normal(k_w, (E, C, PH, PW), dtype=jnp.float32),
        "b": 0.01 * jax.random.normal(k_b, (C,), dtype=jnp.float32),
    }

    out = reconstruct_ddf_forward(
        x, params, in_channels=C, patch_size=(PH, PW), height=HEIGHT, width=WIDTH)
    out = jax.block_until_ready(out)

    ref = reference_forward(
        x, params, in_channels=C, patch_size=(PH, PW), height=HEIGHT, width=WIDTH)

    assert out.shape == (B, C, HEIGHT, WIDTH)
    assert jnp.allclose(out, ref, atol=1e-4, rtol=1e-4), "mismatch vs reference"

    print("KERNEL_OK")
</pallas_src>

<mosaic_0001>
module attributes {stable_mosaic.version = 11 : i64} {
  func.func @_patch_deembed_kernel(%arg0: i32, %arg1: memref<32x32xf32, #tpu.memory_space<vmem>>, %arg2: memref<32x64xf32, #tpu.memory_space<vmem>>, %arg3: memref<1x64xf32, #tpu.memory_space<vmem>>, %arg4: memref<32x64xf32, #tpu.memory_space<vmem>>) attributes {dimension_semantics = [#tpu.dimension_semantics<parallel>], iteration_bounds = array<i64: 1>, scalar_prefetch = 0 : i64, scratch_operands = 0 : i64, tpu.core_type = #tpu.core_type<tc>, window_params = [{transform_indices = @transform_0, window_bounds = array<i64: 32, 32>}, {pipeline_mode = #tpu.pipeline_mode<synchronous>, transform_indices = @transform_1, window_bounds = array<i64: 32, 64>}, {pipeline_mode = #tpu.pipeline_mode<synchronous>, transform_indices = @transform_2, window_bounds = array<i64: 1, 64>}, {transform_indices = @transform_3, window_bounds = array<i64: 32, 64>}]} {
    %c0 = arith.constant 0 : index
    %c0_0 = arith.constant 0 : index
    %0 = vector.load %arg1[%c0, %c0_0] : memref<32x32xf32, #tpu.memory_space<vmem>>, vector<32x32xf32>
    %c0_1 = arith.constant 0 : index
    %c0_2 = arith.constant 0 : index
    %1 = vector.load %arg2[%c0_1, %c0_2] : memref<32x64xf32, #tpu.memory_space<vmem>>, vector<32x64xf32>
    %cst = arith.constant dense<0.000000e+00> : vector<32x64xf32>
    %2 = tpu.matmul %0, %1, %cst {dimension_numbers = #tpu.dot_dimension_numbers<[1], [0], [0], [1], [0, 0, 1, 1], [], []>} : vector<32x32xf32>, vector<32x64xf32>, vector<32x64xf32> -> vector<32x64xf32>
    %c0_3 = arith.constant 0 : index
    %c0_4 = arith.constant 0 : index
    %3 = vector.load %arg3[%c0_3, %c0_4] : memref<1x64xf32, #tpu.memory_space<vmem>>, vector<1x64xf32>
    %4 = vector.broadcast %3 : vector<1x64xf32> to vector<32x64xf32>
    %5 = arith.addf %2, %4 : vector<32x64xf32>
    %c0_5 = arith.constant 0 : index
    %c0_6 = arith.constant 0 : index
    %6 = vector.load %arg4[%c0_5, %c0_6] : memref<32x64xf32, #tpu.memory_space<vmem>>, vector<32x64xf32>
    tpu.vector_store %arg4[%c0_5, %c0_6], %5 {strides = array<i32>} : memref<32x64xf32, #tpu.memory_space<vmem>>, vector<32x64xf32>,
    return
  }
  func.func @transform_0(%arg0: i32) -> (i32, i32) {
    %c0_i32 = arith.constant 0 : i32
    %c0_i32_0 = arith.constant 0 : i32
    return %arg0, %c0_i32 : i32, i32
  }
  func.func @transform_1(%arg0: i32) -> (i32, i32) {
    %c0_i32 = arith.constant 0 : i32
    %c0_i32_0 = arith.constant 0 : i32
    %c0_i32_1 = arith.constant 0 : i32
    return %c0_i32, %c0_i32_0 : i32, i32
  }
  func.func @transform_2(%arg0: i32) -> (i32, i32) {
    %c0_i32 = arith.constant 0 : i32
    %c0_i32_0 = arith.constant 0 : i32
    %c0_i32_1 = arith.constant 0 : i32
    return %c0_i32, %c0_i32_0 : i32, i32
  }
  func.func @transform_3(%arg0: i32) -> (i32, i32) {
    %c0_i32 = arith.constant 0 : i32
    %c0_i32_0 = arith.constant 0 : i32
    return %arg0, %c0_i32 : i32, i32
  }
}

</mosaic_0001>

<bundles_post_ra>
// kernel: tpu_custom_call.1
= control target key start
LH: loop header
LB: loop body
LE: loop exit
PB: predicated region body
PF: predicated region fallthrough
CT: control target
= control target key end

     0   :  { %8 = vsyncpa [#allocation3], 0  ;;  %s372_s0 = inlined_call_operand.hbm [shape: f32[32,32], index: 0, kind: input, shape index: {}]   ;;  %s373_s1 = inlined_call_operand.hbm [shape: f32[32,64], index: 1, kind: input, shape index: {}]   ;;  %s374_s2 = inlined_call_operand.vmem [shape: f32[1,64], index: 2, kind: input, shape index: {}]   ;;  %s375_s3 = inlined_call_operand.hbm [shape: f32[32,64], index: 3, kind: output, shape index: {}]  }
   0x1   :  { %9 = vsyncpa [#allocation6], 0 }
   0x2   :  { %10 = vsyncpa [#allocation4], 0  ;;  %s295_s12 = smov [#allocation2]   ;;  %s223_s16 = scalar_lea.hbm %s372_s0, 512 }
   0x3   :  { %s16_s13 = sshll.u32 %s295_s12, 4  ;;  %p224_p0 = scmp.ne.s32.totalorder %s372_s0, %s223_s16  ;;  %s17_s13 = int_to_ptr.vmem [resolvable:$true] %s16_s13 }
   0x4   :  { %p227_p1 = scmp.lt.u32.totalorder %s223_s16, %s372_s0 }
   0x6   :  { %p229_p2 = pnand %p227_p1, %p224_p0 }
   0x8   :  { %232 = shalt.err (!%p229_p2)
}
   0x9   :  { %s233_s21 = scalar_lea.vmem %s17_s13, 512  ;;  %p238_p4 = scmp.lt.s32.totalorder %s17_s13, %s17_s13 }
   0xa   :  { %p234_p3 = scmp.ne.s32.totalorder %s17_s13, %s233_s21  ;;  %p239_p5 = scmp.lt.s32.totalorder %s233_s21, %s233_s21 }
   0xc   :  { %p240_p6 = por %p239_p5, %p238_p4 }
   0xe   :  { %p241_p7 = pnand %p240_p6, %p234_p3 }
  0x10   :  { %244 = shalt.err (!%p241_p7)
}
  0x11   :  { %s296_s22 = smov 128   ;;  %s297_s23 = smov 8  }
  0x12   :  { %22 = dma.hbm_to_vmem [thread:$0]  %s372_s0, 512, %s17_s13, [#allocation3], %s296_s22, %s296_s22, %s297_s23  }
  0x13   :  { %s298_s26 = smov [#allocation5]   ;;  %s245_s30 = scalar_lea.hbm %s373_s1, 512 }
  0x14   :  { %s28_s27 = sshll.u32 %s298_s26, 4  ;;  %p246_p8 = scmp.ne.s32.totalorder %s373_s1, %s245_s30  ;;  %s29_s27 = int_to_ptr.vmem [resolvable:$true] %s28_s27 }
  0x15   :  { %p249_p9 = scmp.lt.u32.totalorder %s245_s30, %s373_s1 }
  0x17   :  { %p251_p10 = pnand %p249_p9, %p246_p8 }
  0x19   :  { %254 = shalt.err (!%p251_p10)
}
  0x1a   :  { %s255_s8 = scalar_lea.vmem %s29_s27, 512  ;;  %p260_p12 = scmp.lt.s32.totalorder %s29_s27, %s29_s27 }
  0x1b   :  { %p256_p11 = scmp.ne.s32.totalorder %s29_s27, %s255_s8  ;;  %p261_p13 = scmp.lt.s32.totalorder %s255_s8, %s255_s8 }
  0x1d   :  { %p262_p0 = por %p261_p13, %p260_p12 }
  0x1f   :  { %p263_p1 = pnand %p262_p0, %p256_p11 }
  0x21   :  { %266 = shalt.err (!%p263_p1)
}
  0x22   :  { %34 = dma.hbm_to_vmem [thread:$0]  %s373_s1, 512, %s29_s27, [#allocation6], %s296_s22, %s296_s22, %s297_s23  }
  0x23   :  { %289 = dma.done.wait [#allocation3], 512  }
  0x24   :  { %290 = vsyncadd [#allocation3], 4294966784 }
  0x25   :  { %291 = dma.done.wait [#allocation6], 512  }
  0x26   :  { %292 = vsyncadd [#allocation6], 4294966784  ;;  %vm58_vm0 = vcmask 261120   ;;  %v47_v0 = vld [vmem:[#allocation5] sm:$0xff]  ;;  %v48_v1 = vld [vmem:[#allocation5 + $0x8] sm:$0xff]  ;;  %s299_s11 = smov [#allocation7]  }
  0x27   :  { %v49_v2 = vld [vmem:[#allocation5 + $0x10] sm:$0xff]  ;;  %v206_v3 = vpack.c.bf16 %v48_v1, %v47_v0  ;;  %v50_v4 = vld [vmem:[#allocation5 + $0x18] sm:$0xff]  ;;  %v43_v5 = vld [vmem:[#allocation2] sm:$0xff]  ;;  %s166_s12 = sshll.u32 %s299_s11, 4  ;;  %vm156_vm1 = vcmask 523264   ;;  %s167_s12 = int_to_ptr.vmem [resolvable:$true] %s166_s12 }
  0x28   :  { %v45_v6 = vld [vmem:[#allocation2 + $0x10] sm:$0xff]  ;;  %v210_v7 = vpack.c.bf16 %v50_v4, %v49_v2  ;;  %200 = vmatprep.mubr.msk.f32.mxu0 %vm58_vm0, %v43_v5  ;;  %v44_v8 = vld [vmem:[#allocation2 + $0x8] sm:$0xff]  ;;  %v46_v9 = vld [vmem:[#allocation2 + $0x18] sm:$0xff]  ;;  %s267_s13 = scalar_lea.vmem %s167_s12, 512  ;;  %p272_p3 = scmp.lt.s32.totalorder %s167_s12, %s167_s12 }
  0x29   :  { %203 = vmatprep.mubr.msk.f32.mxu1 %vm58_vm0, %v45_v6  ;;  %207 = vmatprep.subr.bf16.mxu0 %v206_v3  ;;  %v179_v10 = vld [vmem:[%s374_s2] ss:$0 sm:$0xff]  ;;  %p268_p2 = scmp.ne.s32.totalorder %s167_s12, %s267_s13  ;;  %p273_p4 = scmp.lt.s32.totalorder %s267_s13, %s267_s13 }
  0x2a   :  { %214 = vmatprep.subr.bf16.mxu1 %v206_v3  ;;  %209 = vmatpush3.bf16.msra.mxu0 %v206_v3 }
  0x2b   :  { %216 = vmatpush3.bf16.msra.mxu1 %v206_v3  ;;  %211 = vmatprep.subr.bf16.mxu0 %v210_v7  ;;  %p274_p5 = por %p273_p4, %p272_p3 }
  0x2c   :  { %215 = vmatprep.subr.bf16.mxu1 %v210_v7 }
  0x2d   :  { %p275_p6 = pnand %p274_p5, %p268_p2 }
  0x2e   :  { %213 = vmatpush3.bf16.msra.mxu0 %v210_v7 }
  0x2f   :  { %217 = vmatpush3.bf16.msra.mxu1 %v210_v7 }
  0x31   :  { %201 = vmatmul.mubr.msk.f32.vlgmr.msra.gmra.mrb[0].mxu0 %vm58_vm0, %v44_v8 }
  0x32   :  { %204 = vmatmul.mubr.msk.f32.vlgmr.msra.gmra.mrb[0].mxu1 %vm58_vm0, %v46_v9 }
 0x104   :  { %v202_v11 = vpop.f32.mrb[0].mxu0 }
 0x105   :  { %v205_v12 = vpop.f32.mrb[0].mxu1  ;;  %v143_v13 = vadd.f32 %v202_v11, %v179_v10  ;;  %v137_v15 = vpop.f32.mrb[1].mxu0 }
 0x106   :  { %v153_v14 = vadd.f32 %v205_v12, %v179_v10  ;;  %v147_v16 = vpop.f32.mrb[1].mxu1  ;;  %v138_v17 = vadd.f32 %v179_v10, %v137_v15 }
 0x107   :  { %v148_v18 = vadd.f32 %v179_v10, %v147_v16  ;;  %158 = vst.msk [vmem:[#allocation7 + $0x8] sm:$0xff] %vm156_vm1, %v143_v13 }
 0x108   :  { %160 = vst.msk [vmem:[#allocation7 + $0x18] sm:$0xff] %vm156_vm1, %v153_v14  ;;  %157 = vst.msk [vmem:[#allocation7] sm:$0xff] %vm156_vm1, %v138_v17 }
 0x109   :  { %159 = vst.msk [vmem:[#allocation7 + $0x10] sm:$0xff] %vm156_vm1, %v148_v18 }
 0x10a   :  { %278 = shalt.err (!%p275_p6)
}
 0x10b   :  { %s279_s15 = scalar_lea.hbm %s375_s3, 512 }
 0x10c   :  { %p280_p7 = scmp.ne.s32.totalorder %s375_s3, %s279_s15  ;;  %p283_p8 = scmp.lt.u32.totalorder %s279_s15, %s375_s3 }
 0x10e   :  { %p285_p9 = pnand %p283_p8, %p280_p7 }
 0x110   :  { %288 = shalt.err (!%p285_p9)
}
 0x111   :  { %172 = dma.vmem_to_hbm [thread:$0]  %s167_s12, 512, %s375_s3, [#allocation4], %s296_s22, %s296_s22, %s297_s23  }
 0x112   :  { %293 = dma.done.wait [#allocation4], 512  }
 0x113   :  { %294 = vsyncadd [#allocation4], 4294966784 }
 0x114   :  { %176 = vsyncpa [#allocation3], 1 }
 0x115   :  { %177 = vsyncpa [#allocation6], 1 }
 0x116   :  { %178 = vsyncpa [#allocation4], 1 }

</bundles_post_ra>
